<compile_context>
chip_gen: v7x
topology: tpu7x:2x2x1
jax: 0.10.0
libtpu: 0.0.40
codegen_flags: <defaults>
</compile_context>

<pallas_src>
import jax
import jax.numpy as jnp
from jax.experimental import pallas as pl
from jax.experimental.pallas import tpu as pltpu


# --------------------------------------------------------------------------
# Pallas kernel: fused residual add + SE (squeeze-excite) gate.
# --------------------------------------------------------------------------
def _add_se_kernel(y_ref, skip_ref, w1_ref, w2_ref, o_ref):
    # y_ref / skip_ref / o_ref: (BT, HW, C)  -- channels on the lane axis
    # w1_ref: (C//R, C)   w2_ref: (C, C//R)  -- original PyTorch Linear layouts
    s = y_ref[...] + skip_ref[...]                       # residual add, I/O dtype

    hw = s.shape[1]
    inv_hw = 1.0 / hw                                    # multiply, not divide

    # squeeze: global average pool over spatial (sublane) axis, f32 accumulate
    pooled = jnp.sum(s.astype(jnp.float32), axis=1) * inv_hw        # (BT, C)

    # excitation: Linear -> ReLU -> Linear -> Sigmoid, all as (BT, C) row
    # vectors; contraction on RHS dim 1 == a @ W.T without any transposes.
    hidden = jax.lax.dot_general(
        pooled, w1_ref[...].astype(jnp.float32),
        dimension_numbers=(((1,), (1,)), ((), ())),
        preferred_element_type=jnp.float32)                          # (BT, C//R)
    hidden = jnp.maximum(hidden, 0.0)
    gate = jax.lax.dot_general(
        hidden, w2_ref[...].astype(jnp.float32),
        dimension_numbers=(((1,), (1,)), ((), ())),
        preferred_element_type=jnp.float32)                          # (BT, C)
    gate = jax.nn.sigmoid(gate)

    # scale: per-channel gate broadcast along lanes; lane-dense store.
    o_ref[...] = (s * gate[:, None, :].astype(s.dtype)).astype(o_ref.dtype)


def _pick_batch_tile(b, hw, c, itemsize, target_block_bytes):
    """Largest divisor of b whose (bt, hw, c) block stays under the byte target
    while keeping >=2 grid steps (megacore / v7x dual tensor-core sharding)."""
    per_img = max(1, hw * c * itemsize)
    cap = max(1, target_block_bytes // per_img)
    if b >= 2:
        cap = min(cap, max(1, b // 2))
    bt = 1
    for d in range(1, b + 1):
        if b % d == 0 and d <= cap:
            bt = d
    return bt


def fused_add_se(y_nhwc, skip_nhwc, w1, w2, *, target_block_bytes=2 * 1024 * 1024):
    """out = SE(y + skip), NHWC tensors; w1: (c//r, c), w2: (c, c//r)."""
    assert y_nhwc.shape == skip_nhwc.shape, (y_nhwc.shape, skip_nhwc.shape)
    b, h, w, c = y_nhwc.shape
    hw = h * w
    c_red = w1.shape[0]
    assert c_red >= 1 and w1.shape == (c_red, c) and w2.shape == (c, c_red)

    out_dtype = y_nhwc.dtype
    y_flat = y_nhwc.reshape(b, hw, c)
    s_flat = skip_nhwc.astype(out_dtype).reshape(b, hw, c)

    bt = _pick_batch_tile(b, hw, c, jnp.dtype(out_dtype).itemsize,
                          target_block_bytes)
    grid = (b // bt,)

    out_flat = pl.pallas_call(
        _add_se_kernel,
        out_shape=jax.ShapeDtypeStruct((b, hw, c), out_dtype),
        grid_spec=pltpu.PrefetchScalarGridSpec(
            num_scalar_prefetch=0,
            grid=grid,
            in_specs=[
                pl.BlockSpec((bt, hw, c), lambda i: (i, 0, 0)),
                pl.BlockSpec((bt, hw, c), lambda i: (i, 0, 0)),
                pl.BlockSpec((c_red, c), lambda i: (0, 0)),
                pl.BlockSpec((c, c_red), lambda i: (0, 0)),
            ],
            out_specs=pl.BlockSpec((bt, hw, c), lambda i: (i, 0, 0)),
        ),
        compiler_params=pltpu.CompilerParams(
            dimension_semantics=("parallel",),
            vmem_limit_bytes=32 * 1024 * 1024,
        ),
    )(y_flat, s_flat, w1, w2)

    return out_flat.reshape(b, h, w, c)


# --------------------------------------------------------------------------
# Full Residual forward (NCHW in / NCHW out, matching the PyTorch module).
# --------------------------------------------------------------------------
def _conv2d_nhwc(x_nhwc, w_oihw, *, stride=1, padding=1):
    w_hwio = jnp.transpose(w_oihw, (2, 3, 1, 0))
    return jax.lax.conv_general_dilated(
        x_nhwc, w_hwio,
        window_strides=(stride, stride),
        padding=((padding, padding), (padding, padding)),
        dimension_numbers=("NHWC", "HWIO", "NHWC"))


def residual_forward(x_nchw, params, *, use_conv=False, strides=1):
    # NCHW -> NHWC once up front so channels live on the lane axis end-to-end.
    x = jnp.transpose(x_nchw, (0, 2, 3, 1))
    y = _conv2d_nhwc(x, params["conv1"], stride=strides, padding=1)
    y = jnp.maximum(y, 0.0)
    y = _conv2d_nhwc(y, params["conv2"], stride=1, padding=1)
    if use_conv:
        skip = _conv2d_nhwc(x, params["conv3"], stride=1, padding=1)
    else:
        skip = x
    out = fused_add_se(y, skip, params["se_w1"], params["se_w2"])
    return jnp.transpose(out, (0, 3, 1, 2))              # back to NCHW


# --------------------------------------------------------------------------
# Pure-JAX reference (independent NCHW path) matching the PyTorch module.
# --------------------------------------------------------------------------
def _conv2d_nchw(x, w, *, stride=1, padding=1):
    return jax.lax.conv_general_dilated(
        x, w, (stride, stride),
        ((padding, padding), (padding, padding)),
        dimension_numbers=("NCHW", "OIHW", "NCHW"))


def residual_ref(x, params, *, use_conv=False, strides=1):
    y = _conv2d_nchw(x, params["conv1"], stride=strides, padding=1)
    y = jnp.maximum(y, 0.0)
    y = _conv2d_nchw(y, params["conv2"], stride=1, padding=1)
    skip = _conv2d_nchw(x, params["conv3"], stride=1, padding=1) if use_conv else x
    s = y + skip
    pooled = jnp.mean(s, axis=(2, 3))                       # (b, c)
    hid = jnp.maximum(pooled @ params["se_w1"].T, 0.0)      # (b, c//r)
    gate = jax.nn.sigmoid(hid @ params["se_w2"].T)          # (b, c)
    return s * gate[:, :, None, None]


if __name__ == "__main__":
    key = jax.random.PRNGKey(0)
    kx, k1, k2, k3, k4 = jax.random.split(key, 5)

    # Residual(input_channels=64, num_channels=64) so the identity skip is valid
    # and channel // reduction >= 1 (reduction = 16).
    batch, channels, spatial, reduction = 2, 64, 16, 16
    c_red = channels // reduction

    x = jax.random.normal(kx, (batch, channels, spatial, spatial),
                          dtype=jnp.float32)

    def _uniform(k, shape, fan_in):
        bound = 1.0 / (fan_in ** 0.5)
        return jax.random.uniform(k, shape, jnp.float32,
                                  minval=-bound, maxval=bound)

    params = {
        "conv1": _uniform(k1, (channels, channels, 3, 3), channels * 9),
        "conv2": _uniform(k2, (channels, channels, 3, 3), channels * 9),
        "se_w1": _uniform(k3, (c_red, channels), channels),
        "se_w2": _uniform(k4, (channels, c_red), c_red),
    }

    out = residual_forward(x, params)
    out = jax.block_until_ready(out)

    ref = residual_ref(x, params)
    assert out.shape == x.shape
    assert out.dtype == x.dtype
    max_err = jnp.max(jnp.abs(out - ref))
    assert jnp.allclose(out, ref, atol=1e-4, rtol=1e-4), (
        f"mismatch vs reference (max abs err {max_err})")

    print("KERNEL_OK")
</pallas_src>

<mosaic_0001>
module attributes {stable_mosaic.version = 11 : i64} {
  func.func @_add_se_kernel(%arg0: i32, %arg1: memref<1x256x64xf32, #tpu.memory_space<vmem>>, %arg2: memref<1x256x64xf32, #tpu.memory_space<vmem>>, %arg3: memref<4x64xf32, #tpu.memory_space<vmem>>, %arg4: memref<64x4xf32, #tpu.memory_space<vmem>>, %arg5: memref<1x256x64xf32, #tpu.memory_space<vmem>>) attributes {dimension_semantics = [#tpu.dimension_semantics<parallel>], iteration_bounds = array<i64: 2>, scalar_prefetch = 0 : i64, scratch_operands = 0 : i64, tpu.core_type = #tpu.core_type<tc>, window_params = [{transform_indices = @transform_0, window_bounds = array<i64: 1, 256, 64>}, {transform_indices = @transform_1, window_bounds = array<i64: 1, 256, 64>}, {pipeline_mode = #tpu.pipeline_mode<synchronous>, transform_indices = @transform_2, window_bounds = array<i64: 4, 64>}, {pipeline_mode = #tpu.pipeline_mode<synchronous>, transform_indices = @transform_3, window_bounds = array<i64: 64, 4>}, {transform_indices = @transform_4, window_bounds = array<i64: 1, 256, 64>}]} {
    %c0 = arith.constant 0 : index
    %c0_0 = arith.constant 0 : index
    %c0_1 = arith.constant 0 : index
    %0 = vector.load %arg1[%c0, %c0_0, %c0_1] : memref<1x256x64xf32, #tpu.memory_space<vmem>>, vector<1x256x64xf32>
    %c0_2 = arith.constant 0 : index
    %c0_3 = arith.constant 0 : index
    %c0_4 = arith.constant 0 : index
    %1 = vector.load %arg2[%c0_2, %c0_3, %c0_4] : memref<1x256x64xf32, #tpu.memory_space<vmem>>, vector<1x256x64xf32>
    %2 = arith.addf %0, %1 : vector<1x256x64xf32>
    %cst = arith.constant dense<0.000000e+00> : vector<1x64xf32>
    %3 = vector.multi_reduction <add>, %2, %cst [1] : vector<1x256x64xf32> to vector<1x64xf32>
    %cst_5 = arith.constant 3.906250e-03 : f32
    %4 = vector.broadcast %cst_5 : f32 to vector<1x64xf32>
    %5 = arith.mulf %3, %4 : vector<1x64xf32>
    %c0_6 = arith.constant 0 : index
    %c0_7 = arith.constant 0 : index
    %6 = vector.load %arg3[%c0_6, %c0_7] : memref<4x64xf32, #tpu.memory_space<vmem>>, vector<4x64xf32>
    %cst_8 = arith.constant dense<0.000000e+00> : vector<1x4xf32>
    %7 = tpu.matmul %5, %6, %cst_8 {dimension_numbers = #tpu.dot_dimension_numbers<[1], [1], [0], [0], [0, 0, 1, 0], [], []>} : vector<1x64xf32>, vector<4x64xf32>, vector<1x4xf32> -> vector<1x4xf32>
    %cst_9 = arith.constant 0.000000e+00 : f32
    %8 = vector.broadcast %cst_9 : f32 to vector<1x4xf32>
    %9 = arith.maximumf %7, %8 : vector<1x4xf32>
    %c0_10 = arith.constant 0 : index
    %c0_11 = arith.constant 0 : index
    %10 = vector.load %arg4[%c0_10, %c0_11] : memref<64x4xf32, #tpu.memory_space<vmem>>, vector<64x4xf32>
    %cst_12 = arith.constant dense<0.000000e+00> : vector<1x64xf32>
    %11 = tpu.matmul %9, %10, %cst_12 {dimension_numbers = #tpu.dot_dimension_numbers<[1], [1], [0], [0], [0, 0, 1, 0], [], []>} : vector<1x4xf32>, vector<64x4xf32>, vector<1x64xf32> -> vector<1x64xf32>
    %12 = arith.negf %11 : vector<1x64xf32>
    %13 = math.exp %12 : vector<1x64xf32>
    %cst_13 = arith.constant 1.000000e+00 : f32
    %14 = vector.broadcast %cst_13 : f32 to vector<1x64xf32>
    %15 = arith.addf %14, %13 : vector<1x64xf32>
    %16 = arith.divf %14, %15 : vector<1x64xf32>
    %17 = vector.shape_cast %16 : vector<1x64xf32> to vector<1x1x64xf32>
    %18 = vector.broadcast %17 : vector<1x1x64xf32> to vector<1x256x64xf32>
    %19 = arith.mulf %2, %18 : vector<1x256x64xf32>
    %c0_14 = arith.constant 0 : index
    %c0_15 = arith.constant 0 : index
    %c0_16 = arith.constant 0 : index
    %20 = vector.load %arg5[%c0_14, %c0_15, %c0_16] : memref<1x256x64xf32, #tpu.memory_space<vmem>>, vector<1x256x64xf32>
    tpu.vector_store %arg5[%c0_14, %c0_15, %c0_16], %19 {strides = array<i32>} : memref<1x256x64xf32, #tpu.memory_space<vmem>>, vector<1x256x64xf32>,
    return
  }
  func.func @transform_0(%arg0: i32) -> (i32, i32, i32) {
    %c0_i32 = arith.constant 0 : i32
    %c0_i32_0 = arith.constant 0 : i32
    %c0_i32_1 = arith.constant 0 : i32
    return %arg0, %c0_i32, %c0_i32_0 : i32, i32, i32
  }
  func.func @transform_1(%arg0: i32) -> (i32, i32, i32) {
    %c0_i32 = arith.constant 0 : i32
    %c0_i32_0 = arith.constant 0 : i32
    %c0_i32_1 = arith.constant 0 : i32
    return %arg0, %c0_i32, %c0_i32_0 : i32, i32, i32
  }
  func.func @transform_2(%arg0: i32) -> (i32, i32) {
    %c0_i32 = arith.constant 0 : i32
    %c0_i32_0 = arith.constant 0 : i32
    %c0_i32_1 = arith.constant 0 : i32
    return %c0_i32, %c0_i32_0 : i32, i32
  }
  func.func @transform_3(%arg0: i32) -> (i32, i32) {
    %c0_i32 = arith.constant 0 : i32
    %c0_i32_0 = arith.constant 0 : i32
    %c0_i32_1 = arith.constant 0 : i32
    return %c0_i32, %c0_i32_0 : i32, i32
  }
  func.func @transform_4(%arg0: i32) -> (i32, i32, i32) {
    %c0_i32 = arith.constant 0 : i32
    %c0_i32_0 = arith.constant 0 : i32
    %c0_i32_1 = arith.constant 0 : i32
    return %arg0, %c0_i32, %c0_i32_0 : i32, i32, i32
  }
}

</mosaic_0001>

<bundles_post_ra>
// kernel: tpu_custom_call.1
= control target key start
LH: loop header
LB: loop body
LE: loop exit
PB: predicated region body
PF: predicated region fallthrough
CT: control target
= control target key end

     0   :  { %s840_s15 = smov 0   ;;  %s1209_s0 = inlined_call_operand.vmem [shape: f32[2,256,64], index: 0, kind: input, shape index: {}]   ;;  %s1210_s1 = inlined_call_operand.vmem [shape: f32[2,256,64], index: 1, kind: input, shape index: {}]   ;;  %s1211_s2 = inlined_call_operand.vmem [shape: f32[4,64], index: 2, kind: input, shape index: {}]   ;;  %s1212_s3 = inlined_call_operand.vmem [shape: f32[64,4], index: 3, kind: input, shape index: {}]   ;;  %s1213_s4 = inlined_call_operand.vmem [shape: f32[2,256,64], index: 4, kind: output, shape index: {}]  }
   0x1 LB: > { %s710_s16 = sadd.s32 4294967295, %s810_s15   ;;  %p714_p0 = scmp.ge.s32.totalorder %s810_s15, 1  ;;  %s810_s15 = sphi %s840_s15, %s14_s15  }
   0x2   : > { %p172_p1 = scmp.lt.s32.totalorder %s810_s15, 3 }
   0x4   : > { %p173_p2 = pnand %p714_p0, %p172_p1 }
   0x5   : > { %v385_v0 = vld [vmem:[%s1211_s2] sm:$0xf] (!%p173_p2)  ;;  %p851_p3 = scmp.lt.s32.totalorder (!%p173_p2), %s710_s16, 1  ;;  %v812_v1 = vmov (!%p173_p2), 0.0   ;;  %vm314_vm0 = vcmask (!%p173_p2), 523264   ;;  %vm813_vm1 = vmmov (!%p173_p2), 0  }
   0x6   : > { %176 = sbr.rel (%p173_p2) target bundleno = 570 (0x23a), region = 36  ;;  %749 = vmatprep.subr.mxu0 (!%p173_p2), %v812_v1  ;;  %751 = vmatprep.mubr.msk.f32.mxu0 (!%p173_p2), %vm813_vm1, %v812_v1  ;;  %v463_v2 = vld [vmem:[%s1212_s3] sm:$0xff] (!%p173_p2)  ;;  %v464_v3 = vld [vmem:[%s1212_s3 + $0x8] sm:$0xff] (!%p173_p2)  ;;  %vm471_vm2 = vcmask (!%p173_p2), 31744   ;;  %v814_v4 = vmov (!%p173_p2), 0.0|0.0   ;;  %v465_v7 = vld [vmem:[%s1212_s3 + $0x10] sm:$0xff] (!%p173_p2) }
   0x7   : > { %750 = vmatpush3.xpose.msk.msra.mxu0 (!%p173_p2), %vm314_vm0, %v385_v0  ;;  %773 = vmatprep.subr.bf16.mxu1 (!%p173_p2), %v814_v4  ;;  %v774_v5 = vpack.c.bf16 (!%p173_p2), %v464_v3, %v463_v2  ;;  %vm864_vm3 = vmpackc.low (!%p173_p2), %vm471_vm2, %vm471_vm2  ;;  %v466_v8 = vld [vmem:[%s1212_s3 + $0x18] sm:$0xff] (!%p173_p2)  ;;  %v467_v10 = vld [vmem:[%s1212_s3 + $0x20] sm:$0xff] (!%p173_p2) }
   0x8   : > { %770 = vmatprep.mubr.msk.f32.mxu1 (!%p173_p2), %vm813_vm1, %v812_v1  ;;  %v778_v9 = vpack.c.bf16 (!%p173_p2), %v466_v8, %v465_v7  ;;  %v468_v11 = vld [vmem:[%s1212_s3 + $0x28] sm:$0xff] (!%p173_p2)  ;;  %v469_v30 = vld [vmem:[%s1212_s3 + $0x30] sm:$0xff] (!%p173_p2)  ;;  %v470_v31 = vld [vmem:[%s1212_s3 + $0x38] sm:$0xff] (!%p173_p2) }
   0x9   : > { %776 = vmatpush3.bf16.xpose.msk.msra.mxu1 (!%p173_p2), %vm864_vm3, %v774_v5  ;;  %v782_v17 = vpack.c.bf16 (!%p173_p2), %v468_v11, %v467_v10  ;;  %v786_v44 = vpack.c.bf16 (!%p173_p2), %v470_v31, %v469_v30 }
   0xa   : > { %777 = vmatprep.subr.bf16.mxu1 (!%p173_p2), %v814_v4 }
   0xd   : > { %s1218_s16 = smov (!%p851_p3, %s710_s16), 1 }
   0xe   : > { %s878_s28 = sshll.u32 %s1218_s16, 8 }
   0xf   : > { %s884_s5 = scalar_lea.vmem %s1209_s0, %s878_s28  ;;  %s892_s8 = scalar_lea.vmem %s1210_s1, %s878_s28 }
  0x10   : > { %v218_v12 = vld [vmem:[%s884_s5] sm:$0xff]  ;;  %v219_v13 = vld [vmem:[%s884_s5 + $0x8] sm:$0xff]  ;;  %v220_v14 = vld [vmem:[%s884_s5 + $0x10] sm:$0xff]  ;;  %s1108_s20 = scalar_lea.vmem %s1213_s4, %s878_s28 }
  0x11   : > { %780 = vmatpush3.bf16.xpose.msk.msra.mxu1 %vm864_vm3, %v778_v9  ;;  %v221_v15 = vld [vmem:[%s884_s5 + $0x18] sm:$0xff]  ;;  %v250_v16 = vld [vmem:[%s892_s8] sm:$0xff]  ;;  %v251_v18 = vld [vmem:[%s892_s8 + $0x8] sm:$0xff] }
  0x12   : > { %781 = vmatprep.subr.bf16.mxu1 %v814_v4  ;;  %v252_v19 = vld [vmem:[%s892_s8 + $0x10] sm:$0xff]  ;;  %v253_v20 = vld [vmem:[%s892_s8 + $0x18] sm:$0xff]  ;;  %v908_v21 = vadd.f32 %v250_v16, %v218_v12  ;;  %v910_v22 = vadd.f32 %v251_v18, %v219_v13  ;;  %v222_v24 = vld [vmem:[%s884_s5 + $0x20] sm:$0xff] }
  0x13   : > { %v912_v23 = vadd.f32 %v252_v19, %v220_v14  ;;  %v254_v25 = vld [vmem:[%s892_s8 + $0x20] sm:$0xff]  ;;  %v223_v27 = vld [vmem:[%s884_s5 + $0x28] sm:$0xff]  ;;  %v919_v28 = vadd.f32 %v253_v20, %v221_v15  ;;  %v224_v32 = vld [vmem:[%s884_s5 + $0x30] sm:$0xff] }
  0x14   : > { %v315_v26 = vsel %vm314_vm0, %v908_v21, 0.0  ;;  %v316_v29 = vsel %vm314_vm0, %v910_v22, 0.0  ;;  %v255_v33 = vld [vmem:[%s892_s8 + $0x28] sm:$0xff]  ;;  %v256_v34 = vld [vmem:[%s892_s8 + $0x30] sm:$0xff]  ;;  %v934_v36 = vadd.f32 %v254_v25, %v222_v24  ;;  %v225_v38 = vld [vmem:[%s884_s5 + $0x38] sm:$0xff] }
  0x15   : > { %v317_v35 = vadd.f32 %v316_v29, %v315_v26  ;;  %v318_v37 = vsel %vm314_vm0, %v912_v23, 0.0  ;;  %v257_v39 = vld [vmem:[%s892_s8 + $0x38] sm:$0xff]  ;;  %v940_v41 = vadd.f32 %v255_v33, %v223_v27  ;;  %v942_v42 = vadd.f32 %v256_v34, %v224_v32  ;;  %v226_v45 = vld [vmem:[%s884_s5 + $0x40] sm:$0xff]  ;;  %v227_v50 = vld [vmem:[%s884_s5 + $0x48] sm:$0xff] }
  0x16   : > { %v320_v43 = vsel %vm314_vm0, %v919_v28, 0.0  ;;  %v258_v46 = vld [vmem:[%s892_s8 + $0x40] sm:$0xff]  ;;  %v948_v48 = vadd.f32 %v257_v39, %v225_v38  ;;  %v322_v49 = vsel %vm314_vm0, %v934_v36, 0.0  ;;  %v259_v51 = vld [vmem:[%s892_s8 + $0x48] sm:$0xff]  ;;  %v228_v56 = vld [vmem:[%s884_s5 + $0x50] sm:$0xff] }
  0x17   : > { %v319_v40 = vadd.f32 %v318_v37, %v317_v35  ;;  %v954_v53 = vadd.f32 %v258_v46, %v226_v45  ;;  %v324_v54 = vsel %vm314_vm0, %v940_v41, 0.0  ;;  %v326_v55 = vsel %vm314_vm0, %v942_v42, 0.0  ;;  %v260_v57 = vld [vmem:[%s892_s8 + $0x50] sm:$0xff]  ;;  %v229_v61 = vld [vmem:[%s884_s5 + $0x58] sm:$0xff]  ;;  %v230_v2 = vld [vmem:[%s884_s5 + $0x60] sm:$0xff] }
  0x18   : > { %v964_v59 = vadd.f32 %v259_v51, %v227_v50  ;;  %v328_v60 = vsel %vm314_vm0, %v948_v48, 0.0  ;;  %v261_v62 = vld [vmem:[%s892_s8 + $0x58] sm:$0xff]  ;;  %v970_v0 = vadd.f32 %v260_v57, %v228_v56  ;;  %v262_v3 = vld [vmem:[%s892_s8 + $0x60] sm:$0xff]  ;;  %v231_v7 = vld [vmem:[%s884_s5 + $0x68] sm:$0xff] }
  0x19   : > { %784 = vmatpush3.bf16.xpose.msk.msra.mxu1 %vm864_vm3, %v782_v17  ;;  %v321_v47 = vadd.f32 %v320_v43, %v319_v40  ;;  %v330_v1 = vsel %vm314_vm0, %v954_v53, 0.0  ;;  %v976_v5 = vadd.f32 %v261_v62, %v229_v61  ;;  %v263_v8 = vld [vmem:[%s892_s8 + $0x68] sm:$0xff]  ;;  %v982_v10 = vadd.f32 %v262_v3, %v230_v2  ;;  %v232_v12 = vld [vmem:[%s884_s5 + $0x70] sm:$0xff]  ;;  %v233_v17 = vld [vmem:[%s884_s5 + $0x78] sm:$0xff] }
  0x1a   : > { %785 = vmatprep.subr.bf16.mxu1 %v814_v4  ;;  %v332_v6 = vsel %vm314_vm0, %v964_v59, 0.0  ;;  %v334_v11 = vsel %vm314_vm0, %v970_v0, 0.0  ;;  %v264_v13 = vld [vmem:[%s892_s8 + $0x70] sm:$0xff]  ;;  %v988_v15 = vadd.f32 %v263_v8, %v231_v7  ;;  %v265_v18 = vld [vmem:[%s892_s8 + $0x78] sm:$0xff]  ;;  %v234_v25 = vld [vmem:[%s884_s5 + $0x80] sm:$0xff] }
  0x1b   : > { %v323_v52 = vadd.f32 %v322_v49, %v321_v47  ;;  %v336_v16 = vsel %vm314_vm0, %v976_v5, 0.0  ;;  %v994_v20 = vadd.f32 %v264_v13, %v232_v12  ;;  %v338_v24 = vsel %vm314_vm0, %v982_v10, 0.0  ;;  %v266_v26 = vld [vmem:[%s892_s8 + $0x80] sm:$0xff]  ;;  %v235_v31 = vld [vmem:[%s884_s5 + $0x88] sm:$0xff]  ;;  %v236_v37 = vld [vmem:[%s884_s5 + $0x90] sm:$0xff] }
  0x1c   : > { %v1000_v29 = vadd.f32 %v265_v18, %v233_v17  ;;  %v340_v30 = vsel %vm314_vm0, %v988_v15, 0.0  ;;  %v267_v32 = vld [vmem:[%s892_s8 + $0x88] sm:$0xff]  ;;  %v1006_v34 = vadd.f32 %v266_v26, %v234_v25  ;;  %v268_v38 = vld [vmem:[%s892_s8 + $0x90] sm:$0xff]  ;;  %v269_v45 = vld [vmem:[%s892_s8 + $0x98] sm:$0xff] }
  0x1d   : > { %v325_v58 = vadd.f32 %v324_v54, %v323_v52  ;;  %v342_v35 = vsel %vm314_vm0, %v994_v20, 0.0  ;;  %v1012_v40 = vadd.f32 %v267_v32, %v235_v31  ;;  %v1018_v47 = vadd.f32 %v268_v38, %v236_v37  ;;  %v238_v50 = vld [vmem:[%s884_s5 + $0xa0] sm:$0xff]  ;;  %v239_v56 = vld [vmem:[%s884_s5 + $0xa8] sm:$0xff]  ;;  %v240_v62 = vld [vmem:[%s884_s5 + $0xb0] sm:$0xff] }
  0x1e   : > { %v344_v43 = vsel %vm314_vm0, %v1000_v29, 0.0  ;;  %v346_v49 = vsel %vm314_vm0, %v1006_v34, 0.0  ;;  %v270_v51 = vld [vmem:[%s892_s8 + $0xa0] sm:$0xff]  ;;  %v271_v57 = vld [vmem:[%s892_s8 + $0xa8] sm:$0xff]  ;;  %v244_v26 = vld [vmem:[%s884_s5 + $0xd0] sm:$0xff] }
  0x1f   : > { %v327_v63 = vadd.f32 %v326_v55, %v325_v58  ;;  %v348_v55 = vsel %vm314_vm0, %v1012_v40, 0.0  ;;  %v350_v61 = vsel %vm314_vm0, %v1018_v47, 0.0  ;;  %v1036_v2 = vadd.f32 %v271_v57, %v239_v56  ;;  %v274_v12 = vld [vmem:[%s892_s8 + $0xc0] sm:$0xff]  ;;  %v243_v17 = vld [vmem:[%s884_s5 + $0xc8] sm:$0xff]  ;;  %v248_v57 = vld [vmem:[%s884_s5 + $0xf0] sm:$0xff] }
  0x20   : > { %v275_v18 = vld [vmem:[%s892_s8 + $0xc8] sm:$0xff] }
  0x21   : > { %788 = vmatpush3.bf16.xpose.msk.msra.mxu1 %vm864_vm3, %v786_v44  ;;  %v329_v4 = vadd.f32 %v328_v60, %v327_v63  ;;  %v237_v44 = vld [vmem:[%s884_s5 + $0x98] sm:$0xff]  ;;  %v1030_v60 = vadd.f32 %v270_v51, %v238_v50  ;;  %v272_v63 = vld [vmem:[%s892_s8 + $0xb0] sm:$0xff]  ;;  %v1060_v31 = vadd.f32 %v275_v18, %v243_v17  ;;  %v247_v50 = vld [vmem:[%s884_s5 + $0xe8] sm:$0xff] }
  0x22   : > { %v1024_v54 = vadd.f32 %v269_v45, %v237_v44  ;;  %v1042_v8 = vadd.f32 %v272_v63, %v240_v62  ;;  %v278_v44 = vld [vmem:[%s892_s8 + $0xe0] sm:$0xff]  ;;  %v279_v51 = vld [vmem:[%s892_s8 + $0xe8] sm:$0xff] }
  0x23   : > { %v331_v9 = vadd.f32 %v330_v1, %v329_v4  ;;  %v241_v4 = vld [vmem:[%s884_s5 + $0xb8] sm:$0xff]  ;;  %v1084_v62 = vadd.f32 %v279_v51, %v247_v50 }
  0x24   : > { %v352_v3 = vsel %vm314_vm0, %v1024_v54, 0.0  ;;  %v358_v25 = vsel %vm314_vm0, %v1042_v8, 0.0 }
  0x25   : > { %v333_v14 = vadd.f32 %v332_v6, %v331_v9  ;;  %v273_v6 = vld [vmem:[%s892_s8 + $0xb8] sm:$0xff]  ;;  %v354_v9 = vsel %vm314_vm0, %v1030_v60, 0.0 }
  0x27   : > { %v335_v19 = vadd.f32 %v334_v11, %v333_v14  ;;  %v242_v11 = vld [vmem:[%s884_s5 + $0xc0] sm:$0xff]  ;;  %v1048_v14 = vadd.f32 %v273_v6, %v241_v4 }
  0x29   : > { %v337_v27 = vadd.f32 %v336_v16, %v335_v19  ;;  %v356_v16 = vsel %vm314_vm0, %v1036_v2, 0.0  ;;  %v360_v32 = vsel %vm314_vm0, %v1048_v14, 0.0 }
  0x2b   : > { %v339_v33 = vadd.f32 %v338_v24, %v337_v27  ;;  %v1054_v24 = vadd.f32 %v274_v12, %v242_v11  ;;  %v276_v27 = vld [vmem:[%s892_s8 + $0xd0] sm:$0xff]  ;;  %v372_v12 = vsel %vm314_vm0, %v1084_v62, 0.0 }
  0x2c   : > { %v1066_v38 = vadd.f32 %v276_v27, %v244_v26 }
  0x2d   : > { %v341_v39 = vadd.f32 %v340_v30, %v339_v33  ;;  %v245_v33 = vld [vmem:[%s884_s5 + $0xd8] sm:$0xff] }
  0x2e   : > { %v366_v56 = vsel %vm314_vm0, %v1066_v38, 0.0 }
  0x2f   : > { %v343_v46 = vadd.f32 %v342_v35, %v341_v39  ;;  %v277_v35 = vld [vmem:[%s892_s8 + $0xd8] sm:$0xff]  ;;  %v362_v39 = vsel %vm314_vm0, %v1054_v24, 0.0 }
  0x31   : > { %v345_v52 = vadd.f32 %v344_v43, %v343_v46  ;;  %v246_v43 = vld [vmem:[%s884_s5 + $0xe0] sm:$0xff]  ;;  %v1072_v46 = vadd.f32 %v277_v35, %v245_v33 }
  0x33   : > { %v347_v58 = vadd.f32 %v346_v49, %v345_v52  ;;  %v364_v49 = vsel %vm314_vm0, %v1060_v31, 0.0  ;;  %v368_v63 = vsel %vm314_vm0, %v1072_v46, 0.0 }
  0x35   : > { %v349_v1 = vadd.f32 %v348_v55, %v347_v58  ;;  %v1078_v55 = vadd.f32 %v278_v44, %v246_v43  ;;  %v280_v58 = vld [vmem:[%s892_s8 + $0xf0] sm:$0xff] }
  0x36   : > { %v1090_v6 = vadd.f32 %v280_v58, %v248_v57 }
  0x37   : > { %v351_v7 = vadd.f32 %v350_v61, %v349_v1  ;;  %v249_v1 = vld [vmem:[%s884_s5 + $0xf8] sm:$0xff] }
  0x39   : > { %v353_v13 = vadd.f32 %v352_v3, %v351_v7  ;;  %v281_v3 = vld [vmem:[%s892_s8 + $0xf8] sm:$0xff]  ;;  %v370_v7 = vsel %vm314_vm0, %v1078_v55, 0.0 }
  0x3a   : > { %v1094_v11 = vadd.f32 %v281_v3, %v249_v1 }
  0x3b   : > { %v355_v19 = vadd.f32 %v354_v9, %v353_v13 }
  0x3c   : > { %v376_v18 = vsel %vm314_vm0, %v1094_v11, 0.0 }
  0x3d   : > { %v357_v30 = vadd.f32 %v356_v16, %v355_v19  ;;  %v374_v16 = vsel %vm314_vm0, %v1090_v6, 0.0 }
  0x3f   : > { %v359_v37 = vadd.f32 %v358_v25, %v357_v30 }
  0x41   : > { %v361_v45 = vadd.f32 %v360_v32, %v359_v37 }
  0x43   : > { %v363_v52 = vadd.f32 %v362_v39, %v361_v45 }
  0x45   : > { %v365_v61 = vadd.f32 %v364_v49, %v363_v52 }
  0x47   : > { %v367_v4 = vadd.f32 %v366_v56, %v365_v61  ;;  %v575_v56 = vlaneseq }
  0x49   : > { %v369_v9 = vadd.f32 %v368_v63, %v367_v4  ;;  %v576_v57 = vshrl.u32 %v575_v56, 7 }
  0x4b   : > { %v371_v13 = vadd.f32 %v370_v7, %v369_v9  ;;  %v577_v58 = vsub.s32 0, %v576_v57 }
  0x4d   : > { %v373_v17 = vadd.f32 %v372_v12, %v371_v13 }
  0x4f   : > { %v375_v19 = vadd.f32 %v374_v16, %v373_v17 }
  0x51   : > { %v377_v25 = vadd.f32 %v376_v18, %v375_v19 }
  0x53   : > { %v378_v26 = vrot.slane %v377_v25, 4 }
  0x55   : > { %v379_v27 = vadd.f32 %v378_v26, %v377_v25 }
  0x57   : > { %v380_v30 = vrot.slane %v379_v27, 2 }
  0x59   : > { %v381_v32 = vadd.f32 %v380_v30, %v379_v27 }
  0x5b   : > { %v382_v33 = vrot.slane %v381_v32, 1 }
  0x5d   : > { %v383_v35 = vadd.f32 %v382_v33, %v381_v32 }
  0x5f   : > { %v384_v37 = vmul.f32 0.00390625, %v383_v35 }
  0x61   : > { %752 = vmatmul.mubr.msk.f32.vlgmr.msra.gmra.mrb[0].mxu0 %vm314_vm0, %v384_v37 }
 0x134   : > { %v458_v39 = vpop.f32.mrb[0].mxu0 }
 0x135   : > { %v462_v43 = vmax.f32 %v458_v39, 0.0  ;;  %v753_v44 = vpop.f32.mrb[1].mxu0 }
 0x137   : > { %771 = vmatmul.mubr.msk.f32.vlgmr.msra.gmra.mrb[0].mxu1 %vm471_vm2, %v462_v43 }
 0x20a   : > { %v565_v45 = vpop.f32.mrb[0].mxu1 }
 0x20b   : > { %v732_v49 = vmul.f32 -1.442695, %v565_v45  ;;  %v772_v50 = vpop.f32.mrb[1].mxu1 }
 0x20d   : > { %800 = vpow2.f32 %v732_v49 }
 0x217   : > { %v801_v51 = vpop.eup %800 }
 0x218   : > { %v572_v52 = vadd.f32 1.0, %v801_v51 }
 0x21a   : > { %802 = vrcp.f32 %v572_v52 }
 0x224   : > { %v803_v61 = vpop.eup %802 }
 0x225   : > { %v578_v63 = vrot.slane %v803_v61, %v577_v58 }
 0x227   : > { %v579_v1 = vmul.f32 %v578_v63, %v908_v21  ;;  %v580_v3 = vmul.f32 %v578_v63, %v910_v22  ;;  %v581_v4 = vmul.f32 %v578_v63, %v912_v23  ;;  %v582_v7 = vmul.f32 %v578_v63, %v919_v28 }
 0x228   : > { %v583_v9 = vmul.f32 %v578_v63, %v934_v36  ;;  %v584_v12 = vmul.f32 %v578_v63, %v940_v41  ;;  %v585_v13 = vmul.f32 %v578_v63, %v942_v42  ;;  %v586_v16 = vmul.f32 %v578_v63, %v948_v48 }
 0x229   : > { %v587_v21 = vmul.f32 %v578_v63, %v954_v53  ;;  %v588_v22 = vmul.f32 %v578_v63, %v964_v59  ;;  %v589_v23 = vmul.f32 %v578_v63, %v970_v0  ;;  %v590_v28 = vmul.f32 %v578_v63, %v976_v5  ;;  %611 = vst.msk [vmem:[%s1108_s20] sm:$0xff] %vm314_vm0, %v579_v1 }
 0x22a   : > { %612 = vst.msk [vmem:[%s1108_s20 + $0x8] sm:$0xff] %vm314_vm0, %v580_v3  ;;  %613 = vst.msk [vmem:[%s1108_s20 + $0x10] sm:$0xff] %vm314_vm0, %v581_v4  ;;  %v591_v36 = vmul.f32 %v578_v63, %v982_v10  ;;  %v592_v41 = vmul.f32 %v578_v63, %v988_v15  ;;  %v593_v42 = vmul.f32 %v578_v63, %v994_v20 }
 0x22b   : > { %614 = vst.msk [vmem:[%s1108_s20 + $0x18] sm:$0xff] %vm314_vm0, %v582_v7  ;;  %v594_v48 = vmul.f32 %v578_v63, %v1000_v29  ;;  %615 = vst.msk [vmem:[%s1108_s20 + $0x20] sm:$0xff] %vm314_vm0, %v583_v9  ;;  %v595_v53 = vmul.f32 %v578_v63, %v1006_v34  ;;  %v596_v59 = vmul.f32 %v578_v63, %v1012_v40 }
 0x22c   : > { %616 = vst.msk [vmem:[%s1108_s20 + $0x28] sm:$0xff] %vm314_vm0, %v584_v12  ;;  %617 = vst.msk [vmem:[%s1108_s20 + $0x30] sm:$0xff] %vm314_vm0, %v585_v13  ;;  %v597_v0 = vmul.f32 %v578_v63, %v1018_v47  ;;  %v598_v5 = vmul.f32 %v578_v63, %v1024_v54  ;;  %v599_v10 = vmul.f32 %v578_v63, %v1030_v60 }
 0x22d   : > { %618 = vst.msk [vmem:[%s1108_s20 + $0x38] sm:$0xff] %vm314_vm0, %v586_v16  ;;  %619 = vst.msk [vmem:[%s1108_s20 + $0x40] sm:$0xff] %vm314_vm0, %v587_v21  ;;  %v600_v15 = vmul.f32 %v578_v63, %v1036_v2  ;;  %v601_v20 = vmul.f32 %v578_v63, %v1042_v8  ;;  %v602_v29 = vmul.f32 %v578_v63, %v1048_v14 }
 0x22e   : > { %620 = vst.msk [vmem:[%s1108_s20 + $0x48] sm:$0xff] %vm314_vm0, %v588_v22  ;;  %621 = vst.msk [vmem:[%s1108_s20 + $0x50] sm:$0xff] %vm314_vm0, %v589_v23  ;;  %v603_v34 = vmul.f32 %v578_v63, %v1054_v24  ;;  %v604_v40 = vmul.f32 %v578_v63, %v1060_v31  ;;  %v605_v47 = vmul.f32 %v578_v63, %v1066_v38 }
 0x22f   : > { %622 = vst.msk [vmem:[%s1108_s20 + $0x58] sm:$0xff] %vm314_vm0, %v590_v28  ;;  %623 = vst.msk [vmem:[%s1108_s20 + $0x60] sm:$0xff] %vm314_vm0, %v591_v36  ;;  %v606_v54 = vmul.f32 %v578_v63, %v1072_v46  ;;  %v607_v60 = vmul.f32 %v578_v63, %v1078_v55  ;;  %v608_v2 = vmul.f32 %v578_v63, %v1084_v62 }
 0x230   : > { %624 = vst.msk [vmem:[%s1108_s20 + $0x68] sm:$0xff] %vm314_vm0, %v592_v41  ;;  %625 = vst.msk [vmem:[%s1108_s20 + $0x70] sm:$0xff] %vm314_vm0, %v593_v42  ;;  %v609_v8 = vmul.f32 %v578_v63, %v1090_v6  ;;  %v610_v14 = vmul.f32 %v578_v63, %v1094_v11 }
 0x231   : > { %626 = vst.msk [vmem:[%s1108_s20 + $0x78] sm:$0xff] %vm314_vm0, %v594_v48  ;;  %627 = vst.msk [vmem:[%s1108_s20 + $0x80] sm:$0xff] %vm314_vm0, %v595_v53 }
 0x232   : > { %628 = vst.msk [vmem:[%s1108_s20 + $0x88] sm:$0xff] %vm314_vm0, %v596_v59  ;;  %629 = vst.msk [vmem:[%s1108_s20 + $0x90] sm:$0xff] %vm314_vm0, %v597_v0 }
 0x233   : > { %630 = vst.msk [vmem:[%s1108_s20 + $0x98] sm:$0xff] %vm314_vm0, %v598_v5  ;;  %631 = vst.msk [vmem:[%s1108_s20 + $0xa0] sm:$0xff] %vm314_vm0, %v599_v10 }
 0x234   : > { %632 = vst.msk [vmem:[%s1108_s20 + $0xa8] sm:$0xff] %vm314_vm0, %v600_v15  ;;  %633 = vst.msk [vmem:[%s1108_s20 + $0xb0] sm:$0xff] %vm314_vm0, %v601_v20 }
 0x235   : > { %634 = vst.msk [vmem:[%s1108_s20 + $0xb8] sm:$0xff] %vm314_vm0, %v602_v29  ;;  %635 = vst.msk [vmem:[%s1108_s20 + $0xc0] sm:$0xff] %vm314_vm0, %v603_v34 }
 0x236   : > { %636 = vst.msk [vmem:[%s1108_s20 + $0xc8] sm:$0xff] %vm314_vm0, %v604_v40  ;;  %637 = vst.msk [vmem:[%s1108_s20 + $0xd0] sm:$0xff] %vm314_vm0, %v605_v47 }
 0x237   : > { %638 = vst.msk [vmem:[%s1108_s20 + $0xd8] sm:$0xff] %vm314_vm0, %v606_v54  ;;  %639 = vst.msk [vmem:[%s1108_s20 + $0xe0] sm:$0xff] %vm314_vm0, %v607_v60 }
 0x238   : > { %640 = vst.msk [vmem:[%s1108_s20 + $0xe8] sm:$0xff] %vm314_vm0, %v608_v2  ;;  %641 = vst.msk [vmem:[%s1108_s20 + $0xf0] sm:$0xff] %vm314_vm0, %v609_v8 }
 0x239   : > { %642 = vst.msk [vmem:[%s1108_s20 + $0xf8] sm:$0xff] %vm314_vm0, %v610_v14 }
 0x23a PF: > { %s14_s15 = sadd.s32 1, %s810_s15  }
 0x23b   : > { %p11_p4 = scmp.ge.s32.totalorder %s14_s15, 4  }
 0x23d   :  { %13 = sbr.rel (!%p11_p4) target bundleno = 1 (0x1), region = 69 }

</bundles_post_ra>
